<compile_context>
chip_gen: v7x
topology: tpu7x:2x2x1
jax: 0.10.0
libtpu: 0.0.40
codegen_flags: <defaults>
</compile_context>

<pallas_src>
import functools

import jax
import jax.numpy as jnp
from jax import lax
from jax.experimental import pallas as pl
from jax.experimental.pallas import tpu as pltpu


def value_net_kernel(x_ref, w1_ref, b1_ref, w2_ref, b2_ref, w3_ref, b3_ref, out_ref):
    """Fused 3-layer MLP on one (tile_b, in_dim) batch tile -> (tile_b, 1) values."""
    cdt = w1_ref.dtype  # streaming/compute dtype of the weights (e.g. bf16)

    # Layer 1: (tile_b, in_dim) @ (in_dim, H); accumulate f32, bias+ReLU in f32.
    h = jnp.dot(x_ref[...].astype(cdt), w1_ref[...],
                preferred_element_type=jnp.float32)
    h = jnp.maximum(h + b1_ref[...], 0.0)

    # Layer 2: (tile_b, H) @ (H, H).
    h = jnp.dot(h.astype(cdt), w2_ref[...], preferred_element_type=jnp.float32)
    h = jnp.maximum(h + b2_ref[...], 0.0)

    # Output layer: (tile_b, H) @ (H, 1) -> (tile_b, 1). No activation transpose.
    v = jnp.dot(h.astype(cdt), w3_ref[...], preferred_element_type=jnp.float32)
    out_ref[...] = v + b3_ref[...]


def _round_up(x, m):
    return (x + m - 1) // m * m


def _round_down(x, m):
    return (x // m) * m


_SUBLANE = {4: 8, 2: 16, 1: 32}


def _padded_block_bytes(shape, itemsize):
    """VMEM bytes of a 2-D block after (sublane, 128-lane) layout padding."""
    r, c = shape
    sub = _SUBLANE.get(itemsize, 8)
    return _round_up(max(r, 1), sub) * _round_up(max(c, 1), 128) * itemsize


def _vmem_bytes_estimate(tile_b, in_dim, hidden, x_itemsize, w_itemsize):
    """Per-step VMEM footprint with layout padding and real buffer counts."""
    x_buf = 2 * _padded_block_bytes((tile_b, in_dim), x_itemsize)     # double-buffered stream
    w_buf = (_padded_block_bytes((in_dim, hidden), w_itemsize)        # single-buffered consts
             + _padded_block_bytes((hidden, hidden), w_itemsize)
             + _padded_block_bytes((hidden, 1), w_itemsize))
    b_buf = 2 * _padded_block_bytes((1, hidden), 4) + _padded_block_bytes((1, 1), 4)
    out_buf = 2 * _padded_block_bytes((tile_b, 1), 4)
    act = 2 * _padded_block_bytes((tile_b, hidden), 4)                # f32 activations
    return x_buf + w_buf + b_buf + out_buf + act


def _vmem_budget_bytes():
    """~50% of this generation's VMEM, capped so v7x (64 MiB/TC) stays safe."""
    phys = 64 * 1024 * 1024  # conservative fallback (v7x per-TC physical)
    try:
        phys = int(getattr(pltpu.get_tpu_info(), "vmem_capacity_bytes", phys))
    except Exception:
        pass
    return min(phys // 2, 48 * 1024 * 1024)


def value_network_forward(x, params, *, tile_b=2048):
    """x: (B, in_dim). params: prepared dict (see prepare_params). Returns (B,) f32.

    Weight layout: w1 (in_dim, H), w2 (H, H), w3 (H, 1) -- transposed vs. torch's
    (out_features, in_features); biases are (1, out) / (1, 1) rows.
    """
    B, in_dim = x.shape
    hidden = params["w1"].shape[1]
    x_itemsize = jnp.dtype(x.dtype).itemsize
    w_itemsize = jnp.dtype(params["w1"].dtype).itemsize

    # --- tile selection -------------------------------------------------------
    tile_b = max(128, _round_down(int(tile_b), 128))
    tile_b = min(tile_b, _round_up(B, 128))
    # >= 2 grid steps when the batch allows it, so both v7x TensorCores get work
    # (near-free elsewhere: ~0.35 us per extra grid step).
    if B >= 256:
        tile_b = min(tile_b, max(128, _round_down(_round_up(B, 128) // 2, 128)))
    budget = _vmem_budget_bytes()
    while (tile_b > 128 and
           _vmem_bytes_estimate(tile_b, in_dim, hidden, x_itemsize, w_itemsize) > budget):
        tile_b = max(128, _round_down(tile_b // 2, 128))

    # Final partial block handled by Pallas; no jnp.pad copy of x in HBM.
    grid = (pl.cdiv(B, tile_b),)

    def const_spec(shape):
        # Constant index_map -> fetched once; single buffer (no double-buffer waste).
        return pl.BlockSpec(shape, lambda i: (0,) * len(shape),
                            pipeline_mode=pl.Buffered(1))

    flops = 2 * B * (in_dim * hidden + hidden * hidden + hidden)
    bytes_accessed = (
        x.size * x_itemsize
        + (params["w1"].size + params["w2"].size + params["w3"].size) * w_itemsize
        + (params["b1"].size + params["b2"].size + params["b3"].size) * 4
        + B * 4)

    out = pl.pallas_call(
        value_net_kernel,
        out_shape=jax.ShapeDtypeStruct((B, 1), jnp.float32),
        grid_spec=pltpu.PrefetchScalarGridSpec(
            num_scalar_prefetch=0,
            grid=grid,
            in_specs=[
                pl.BlockSpec((tile_b, in_dim), lambda i: (i, 0)),  # x tile (the only moving stream)
                const_spec((in_dim, hidden)),                      # w1
                const_spec((1, hidden)),                           # b1
                const_spec((hidden, hidden)),                      # w2
                const_spec((1, hidden)),                           # b2
                const_spec((hidden, 1)),                           # w3 (column)
                const_spec((1, 1)),                                # b3
            ],
            out_specs=pl.BlockSpec((tile_b, 1), lambda i: (i, 0)),
        ),
        compiler_params=pltpu.CompilerParams(
            dimension_semantics=("parallel",),
            vmem_limit_bytes=int(budget),
        ),
        cost_estimate=pl.CostEstimate(
            flops=flops, transcendentals=0, bytes_accessed=bytes_accessed),
    )(x, params["w1"], params["b1"], params["w2"], params["b2"],
      params["w3"], params["b3"])

    return out[:, 0]  # squeeze(-1)


def init_params(key, in_dim, hidden_dim):
    """Deterministic synthetic init; shapes match the PyTorch module (weights transposed)."""
    ks = jax.random.split(key, 6)
    s1 = 1.0 / jnp.sqrt(in_dim)
    s2 = 1.0 / jnp.sqrt(hidden_dim)
    return {
        "w1": jax.random.uniform(ks[0], (in_dim, hidden_dim), jnp.float32, -s1, s1),
        "b1": jax.random.uniform(ks[1], (1, hidden_dim), jnp.float32, -s1, s1),
        "w2": jax.random.uniform(ks[2], (hidden_dim, hidden_dim), jnp.float32, -s2, s2),
        "b2": jax.random.uniform(ks[3], (1, hidden_dim), jnp.float32, -s2, s2),
        "w3": jax.random.uniform(ks[4], (hidden_dim, 1), jnp.float32, -s2, s2),
        "b3": jax.random.uniform(ks[5], (1, 1), jnp.float32, -s2, s2),
    }


def prepare_params(params, compute_dtype=jnp.bfloat16):
    """One-time dtype prep (hoisted out of the per-call forward path):
    weights in the streaming/compute dtype, biases in f32."""
    return {
        "w1": params["w1"].astype(compute_dtype),
        "w2": params["w2"].astype(compute_dtype),
        "w3": params["w3"].astype(compute_dtype),
        "b1": params["b1"].astype(jnp.float32),
        "b2": params["b2"].astype(jnp.float32),
        "b3": params["b3"].astype(jnp.float32),
    }


def reference_forward(x, params, compute_dtype=jnp.float32):
    """Plain-JAX reference mirroring the kernel's compute-dtype rounding."""
    f32 = jnp.float32
    rd = lambda a: a.astype(compute_dtype).astype(f32)
    dot = functools.partial(jnp.dot, precision=lax.Precision.HIGHEST)
    h = jnp.maximum(dot(rd(x), rd(params["w1"])) + params["b1"].astype(f32), 0.0)
    h = jnp.maximum(dot(rd(h), rd(params["w2"])) + params["b2"].astype(f32), 0.0)
    v = dot(rd(h), rd(params["w3"])) + params["b3"].astype(f32)
    return v[:, 0]


if __name__ == "__main__":
    key = jax.random.PRNGKey(0)
    k_x, k_p = jax.random.split(key)

    # Small demo shapes; batch deliberately NOT a multiple of the tile so the
    # no-pad partial-final-block path is exercised; tile_b=128 gives a
    # multi-step grid.
    batch, in_dim, hidden_dim = 200, 32, 64
    x = jax.random.normal(k_x, (batch, in_dim), jnp.float32)
    params = init_params(k_p, in_dim, hidden_dim)

    # f32 path: tight check against the reference.
    p_f32 = prepare_params(params, jnp.float32)
    out_f32 = jax.block_until_ready(value_network_forward(x, p_f32, tile_b=128))
    ref_f32 = reference_forward(x, params, jnp.float32)
    assert out_f32.shape == (batch,), out_f32.shape
    assert jnp.allclose(out_f32, ref_f32, atol=1e-4, rtol=1e-4), (
        float(jnp.max(jnp.abs(out_f32 - ref_f32))))

    # bf16 streaming path (perf default): reference applies the same rounding.
    p_bf16 = prepare_params(params, jnp.bfloat16)
    out_bf16 = jax.block_until_ready(value_network_forward(x, p_bf16, tile_b=128))
    ref_bf16 = reference_forward(x, params, jnp.bfloat16)
    assert out_bf16.shape == (batch,), out_bf16.shape
    assert jnp.allclose(out_bf16, ref_bf16, atol=2e-3, rtol=2e-3), (
        float(jnp.max(jnp.abs(out_bf16 - ref_bf16))))

    # Default tile-selection path (exercises the VMEM-budget / tile sizing code).
    out_def = jax.block_until_ready(value_network_forward(x, p_bf16))
    assert out_def.shape == (batch,), out_def.shape
    assert jnp.allclose(out_def, ref_bf16, atol=2e-3, rtol=2e-3), (
        float(jnp.max(jnp.abs(out_def - ref_bf16))))

    print("KERNEL_OK")
</pallas_src>

<mosaic_0001>
module attributes {stable_mosaic.version = 11 : i64} {
  func.func @value_net_kernel(%arg0: i32, %arg1: memref<128x32xf32, #tpu.memory_space<vmem>>, %arg2: memref<32x64xf32, #tpu.memory_space<vmem>>, %arg3: memref<1x64xf32, #tpu.memory_space<vmem>>, %arg4: memref<64x64xf32, #tpu.memory_space<vmem>>, %arg5: memref<1x64xf32, #tpu.memory_space<vmem>>, %arg6: memref<64x1xf32, #tpu.memory_space<vmem>>, %arg7: memref<1x1xf32, #tpu.memory_space<vmem>>, %arg8: memref<128x1xf32, #tpu.memory_space<vmem>>) attributes {dimension_semantics = [#tpu.dimension_semantics<parallel>], iteration_bounds = array<i64: 2>, scalar_prefetch = 0 : i64, scratch_operands = 0 : i64, tpu.core_type = #tpu.core_type<tc>, window_params = [{transform_indices = @transform_0, window_bounds = array<i64: 128, 32>}, {pipeline_mode = #tpu.pipeline_mode<synchronous>, transform_indices = @transform_1, window_bounds = array<i64: 32, 64>}, {pipeline_mode = #tpu.pipeline_mode<synchronous>, transform_indices = @transform_2, window_bounds = array<i64: 1, 64>}, {pipeline_mode = #tpu.pipeline_mode<synchronous>, transform_indices = @transform_3, window_bounds = array<i64: 64, 64>}, {pipeline_mode = #tpu.pipeline_mode<synchronous>, transform_indices = @transform_4, window_bounds = array<i64: 1, 64>}, {pipeline_mode = #tpu.pipeline_mode<synchronous>, transform_indices = @transform_5, window_bounds = array<i64: 64, 1>}, {pipeline_mode = #tpu.pipeline_mode<synchronous>, transform_indices = @transform_6, window_bounds = array<i64: 1, 1>}, {transform_indices = @transform_7, window_bounds = array<i64: 128, 1>}]} {
    %c0 = arith.constant 0 : index
    %c0_0 = arith.constant 0 : index
    %0 = vector.load %arg1[%c0, %c0_0] : memref<128x32xf32, #tpu.memory_space<vmem>>, vector<128x32xf32>
    %c0_1 = arith.constant 0 : index
    %c0_2 = arith.constant 0 : index
    %1 = vector.load %arg2[%c0_1, %c0_2] : memref<32x64xf32, #tpu.memory_space<vmem>>, vector<32x64xf32>
    %cst = arith.constant dense<0.000000e+00> : vector<128x64xf32>
    %2 = tpu.matmul %0, %1, %cst {dimension_numbers = #tpu.dot_dimension_numbers<[1], [0], [0], [1], [0, 0, 1, 1], [], []>} : vector<128x32xf32>, vector<32x64xf32>, vector<128x64xf32> -> vector<128x64xf32>
    %c0_3 = arith.constant 0 : index
    %c0_4 = arith.constant 0 : index
    %3 = vector.load %arg3[%c0_3, %c0_4] : memref<1x64xf32, #tpu.memory_space<vmem>>, vector<1x64xf32>
    %4 = vector.broadcast %3 : vector<1x64xf32> to vector<128x64xf32>
    %5 = arith.addf %2, %4 : vector<128x64xf32>
    %cst_5 = arith.constant 0.000000e+00 : f32
    %6 = vector.broadcast %cst_5 : f32 to vector<128x64xf32>
    %7 = arith.maximumf %5, %6 : vector<128x64xf32>
    %c0_6 = arith.constant 0 : index
    %c0_7 = arith.constant 0 : index
    %8 = vector.load %arg4[%c0_6, %c0_7] : memref<64x64xf32, #tpu.memory_space<vmem>>, vector<64x64xf32>
    %cst_8 = arith.constant dense<0.000000e+00> : vector<128x64xf32>
    %9 = tpu.matmul %7, %8, %cst_8 {dimension_numbers = #tpu.dot_dimension_numbers<[1], [0], [0], [1], [0, 0, 1, 1], [], []>} : vector<128x64xf32>, vector<64x64xf32>, vector<128x64xf32> -> vector<128x64xf32>
    %c0_9 = arith.constant 0 : index
    %c0_10 = arith.constant 0 : index
    %10 = vector.load %arg5[%c0_9, %c0_10] : memref<1x64xf32, #tpu.memory_space<vmem>>, vector<1x64xf32>
    %11 = vector.broadcast %10 : vector<1x64xf32> to vector<128x64xf32>
    %12 = arith.addf %9, %11 : vector<128x64xf32>
    %cst_11 = arith.constant 0.000000e+00 : f32
    %13 = vector.broadcast %cst_11 : f32 to vector<128x64xf32>
    %14 = arith.maximumf %12, %13 : vector<128x64xf32>
    %c0_12 = arith.constant 0 : index
    %c0_13 = arith.constant 0 : index
    %15 = vector.load %arg6[%c0_12, %c0_13] : memref<64x1xf32, #tpu.memory_space<vmem>>, vector<64x1xf32>
    %cst_14 = arith.constant dense<0.000000e+00> : vector<128x1xf32>
    %16 = tpu.matmul %14, %15, %cst_14 {dimension_numbers = #tpu.dot_dimension_numbers<[1], [0], [0], [1], [0, 0, 1, 1], [], []>} : vector<128x64xf32>, vector<64x1xf32>, vector<128x1xf32> -> vector<128x1xf32>
    %c0_15 = arith.constant 0 : index
    %c0_16 = arith.constant 0 : index
    %17 = vector.load %arg7[%c0_15, %c0_16] : memref<1x1xf32, #tpu.memory_space<vmem>>, vector<1x1xf32>
    %18 = vector.broadcast %17 : vector<1x1xf32> to vector<128x1xf32>
    %19 = arith.addf %16, %18 : vector<128x1xf32>
    %c0_17 = arith.constant 0 : index
    %c0_18 = arith.constant 0 : index
    %20 = vector.load %arg8[%c0_17, %c0_18] : memref<128x1xf32, #tpu.memory_space<vmem>>, vector<128x1xf32>
    tpu.vector_store %arg8[%c0_17, %c0_18], %19 {strides = array<i32>} : memref<128x1xf32, #tpu.memory_space<vmem>>, vector<128x1xf32>,
    return
  }
  func.func @transform_0(%arg0: i32) -> (i32, i32) {
    %c0_i32 = arith.constant 0 : i32
    %c0_i32_0 = arith.constant 0 : i32
    return %arg0, %c0_i32 : i32, i32
  }
  func.func @transform_1(%arg0: i32) -> (i32, i32) {
    %c0_i32 = arith.constant 0 : i32
    %c0_i32_0 = arith.constant 0 : i32
    %c0_i32_1 = arith.constant 0 : i32
    return %c0_i32, %c0_i32_0 : i32, i32
  }
  func.func @transform_2(%arg0: i32) -> (i32, i32) {
    %c0_i32 = arith.constant 0 : i32
    %c0_i32_0 = arith.constant 0 : i32
    %c0_i32_1 = arith.constant 0 : i32
    return %c0_i32, %c0_i32_0 : i32, i32
  }
  func.func @transform_3(%arg0: i32) -> (i32, i32) {
    %c0_i32 = arith.constant 0 : i32
    %c0_i32_0 = arith.constant 0 : i32
    %c0_i32_1 = arith.constant 0 : i32
    return %c0_i32, %c0_i32_0 : i32, i32
  }
  func.func @transform_4(%arg0: i32) -> (i32, i32) {
    %c0_i32 = arith.constant 0 : i32
    %c0_i32_0 = arith.constant 0 : i32
    %c0_i32_1 = arith.constant 0 : i32
    return %c0_i32, %c0_i32_0 : i32, i32
  }
  func.func @transform_5(%arg0: i32) -> (i32, i32) {
    %c0_i32 = arith.constant 0 : i32
    %c0_i32_0 = arith.constant 0 : i32
    %c0_i32_1 = arith.constant 0 : i32
    return %c0_i32, %c0_i32_0 : i32, i32
  }
  func.func @transform_6(%arg0: i32) -> (i32, i32) {
    %c0_i32 = arith.constant 0 : i32
    %c0_i32_0 = arith.constant 0 : i32
    %c0_i32_1 = arith.constant 0 : i32
    return %c0_i32, %c0_i32_0 : i32, i32
  }
  func.func @transform_7(%arg0: i32) -> (i32, i32) {
    %c0_i32 = arith.constant 0 : i32
    %c0_i32_0 = arith.constant 0 : i32
    return %arg0, %c0_i32 : i32, i32
  }
}

</mosaic_0001>

<bundles_post_ra>
// kernel: tpu_custom_call.1
= control target key start
LH: loop header
LB: loop body
LE: loop exit
PB: predicated region body
PF: predicated region fallthrough
CT: control target
= control target key end

     0   :  { %s2089_s0 = inlined_call_operand.vmem [shape: f32[200,32], index: 0, kind: input, shape index: {}]   ;;  %s2090_s1 = inlined_call_operand.vmem [shape: f32[32,64], index: 1, kind: input, shape index: {}]   ;;  %s2091_s2 = inlined_call_operand.vmem [shape: f32[1,64], index: 2, kind: input, shape index: {}]   ;;  %s2092_s3 = inlined_call_operand.vmem [shape: f32[64,64], index: 3, kind: input, shape index: {}]   ;;  %s2093_s4 = inlined_call_operand.vmem [shape: f32[1,64], index: 4, kind: input, shape index: {}]   ;;  %s2094_s5 = inlined_call_operand.vmem [shape: f32[64,1], index: 5, kind: input, shape index: {}]   ;;  %s2095_s6 = inlined_call_operand.<no memory space> [shape: f32[1,1], index: 6, kind: input, shape index: {}]   ;;  %s2096_s7 = inlined_call_operand.vmem [shape: f32[200,1], index: 7, kind: output, shape index: {}]  }
   0x1   :  { %v12_v0 = vstv %s2095_s6 }
   0x2   :  { %13 = vst [vmem:[#allocation2] sm:$0x1] %v12_v0 }
   0x3   :  { %s1785_s26 = smov 0   ;;  %s1787_s27 = smov 0  }
   0x4   :  { %s1789_s28 = smov 0  }
   0x5 LB: > { %s1798_s6 = sadd.s32 4294967295, %s1708_s28   ;;  %s1800_s29 = sadd.s32 1, %s1708_s28   ;;  %s1708_s28 = sphi %s1789_s28, %s2103_s28   ;;  %s1704_s27 = sphi %s1787_s27, %s2102_s27   ;;  %s1700_s26 = sphi %s1785_s26, %s2101_s26  }
   0x6   : > { %s175_s30 = ssub.s32 %s1708_s28, %s1800_s29  ;;  %s178_s8 = sadd.s32 1, %s1704_s27 }
   0x7   : > { %p176_p0 = scmp.eq.s32.totalorder %s175_s30, 0  ;;  %p188_p1 = scmp.ne.s32.totalorder %s1704_s27, %s1700_s26 }
   0x8   : > { %p189_p2 = scmp.eq.s32.totalorder %s1798_s6, 1  ;;  %p1267_p3 = scmp.ge.s32.totalorder %s1708_s28, 1 }
   0x9   : > { %s1808_s9 = scalar_select %p176_p0, %s1704_s27, %s178_s8  }
   0xa   : > { %p1810_p4 = por %p189_p2, %p188_p1  ;;  %p248_p5 = scmp.lt.s32.totalorder %s1708_s28, 3 }
   0xc   : > { %p249_p6 = pnand %p1267_p3, %p248_p5 }
   0xd   : > { %v318_v1 = vld [vmem:[%s2090_s1] sm:$0xff] (!%p249_p6)  ;;  %v319_v2 = vld [vmem:[%s2090_s1 + $0x8] sm:$0xff] (!%p249_p6)  ;;  %v320_v3 = vld [vmem:[%s2090_s1 + $0x10] sm:$0xff] (!%p249_p6)  ;;  %s1824_s17 = sshll.u32 (!%p249_p6), %s1798_s6, 4  ;;  %vm329_vm0 = vcmask (!%p249_p6), 261120   ;;  %vm554_vm1 = vcmask (!%p249_p6), 523264  }
   0xe   : > { %252 = sbr.rel (%p249_p6) target bundleno = 756 (0x2f4), region = 48  ;;  %v1522_v4 = vpack.c.bf16 (!%p249_p6), %v319_v2, %v318_v1  ;;  %v321_v5 = vld [vmem:[%s2090_s1 + $0x18] sm:$0xff] (!%p249_p6)  ;;  %p288_p7 = scmp.lt.s32.totalorder (!%p249_p6), %s1824_s17, 24  ;;  %v539_v7 = vld [vmem:[%s2092_s3] sm:$0xff] (!%p249_p6)  ;;  %v540_v8 = vld [vmem:[%s2092_s3 + $0x8] sm:$0xff] (!%p249_p6)  ;;  %vm972_vm2 = vcmask (!%p249_p6), 7168  }
   0xf   : > { %v1526_v6 = vpack.c.bf16 (!%p249_p6), %v321_v5, %v320_v3  ;;  %v1530_v9 = vpack.c.bf16 (!%p249_p6), %v540_v8, %v539_v7  ;;  %v541_v11 = vld [vmem:[%s2092_s3 + $0x10] sm:$0xff] (!%p249_p6)  ;;  %v542_v12 = vld [vmem:[%s2092_s3 + $0x18] sm:$0xff] (!%p249_p6)  ;;  %v543_v19 = vld [vmem:[%s2092_s3 + $0x20] sm:$0xff] (!%p249_p6)  ;;  %s280_s30 = sand.u32 (!%p249_p6), 1, %s1700_s26  }
  0x10   : > { %1523 = vmatprep.subr.bf16.mxu0 (!%p249_p6), %v1522_v4  ;;  %1562 = vmatprep.subr.bf16.mxu1 (!%p249_p6), %v1522_v4  ;;  %v1534_v18 = vpack.c.bf16 (!%p249_p6), %v542_v12, %v541_v11  ;;  %v544_v20 = vld [vmem:[%s2092_s3 + $0x28] sm:$0xff] (!%p249_p6)  ;;  %v545_v32 = vld [vmem:[%s2092_s3 + $0x30] sm:$0xff] (!%p249_p6)  ;;  %v546_v33 = vld [vmem:[%s2092_s3 + $0x38] sm:$0xff] (!%p249_p6) }
  0x11   : > { %1525 = vmatpush3.bf16.msra.mxu0 (!%p249_p6), %v1522_v4  ;;  %1564 = vmatpush3.bf16.msra.mxu1 (!%p249_p6), %v1522_v4  ;;  %v1538_v25 = vpack.c.bf16 (!%p249_p6), %v544_v20, %v543_v19  ;;  %v1542_v34 = vpack.c.bf16 (!%p249_p6), %v546_v33, %v545_v32  ;;  %v764_v35 = vld [vmem:[%s2094_s5] sm:$0xff] (!%p249_p6)  ;;  %v765_v36 = vld [vmem:[%s2094_s5 + $0x8] sm:$0xff] (!%p249_p6)  ;;  %v766_v37 = vld [vmem:[%s2094_s5 + $0x10] sm:$0xff] (!%p249_p6) }
  0x12   : > { %1527 = vmatprep.subr.bf16.mxu0 (!%p249_p6), %v1526_v6  ;;  %1563 = vmatprep.subr.bf16.mxu1 (!%p249_p6), %v1526_v6  ;;  %v1546_v38 = vpack.c.bf16 (!%p249_p6), %v765_v36, %v764_v35  ;;  %v767_v39 = vld [vmem:[%s2094_s5 + $0x18] sm:$0xff] (!%p249_p6)  ;;  %v768_v41 = vld [vmem:[%s2094_s5 + $0x20] sm:$0xff] (!%p249_p6)  ;;  %v769_v42 = vld [vmem:[%s2094_s5 + $0x28] sm:$0xff] (!%p249_p6) }
  0x13   : > { %v1550_v40 = vpack.c.bf16 (!%p249_p6), %v767_v39, %v766_v37  ;;  %v1554_v43 = vpack.c.bf16 (!%p249_p6), %v769_v42, %v768_v41  ;;  %v1271_v44 = vld [vmem:[%s2091_s2] ss:$0 sm:$0xff] (!%p249_p6) }
  0x14   : > { %v1288_v32 = vld [vmem:[%s2093_s4] ss:$0 sm:$0xff] (!%p249_p6) }
  0x15   : > { %s289_s20 = scalar_select %p288_p7, %s1824_s17, 24  ;;  %1529 = vmatpush3.bf16.msra.mxu0 %v1526_v6  ;;  %1565 = vmatpush3.bf16.msra.mxu1 %v1526_v6 }
  0x16   : > { %1531 = vmatprep.subr.bf16.mxu1 %v1530_v9  ;;  %1547 = vmatprep.subr.bf16.mxu0 %v1546_v38  ;;  %s997_s26 = ssub.s32 (%p1810_p4), 25, %s1824_s17  ;;  %s1339_s12 = sshll.u32 (%p1810_p4), %s1798_s6, 7 }
  0x17   : > { %s1270_s25 = sshll.u32 %s289_s20, 3  ;;  %p998_p8 = scmp.lt.s32.totalorder (%p1810_p4), %s997_s26, 16 }
  0x18   : > { %s1840_s8 = scalar_lea.vmem %s2089_s0, %s1270_s25  ;;  %s1996_s15 = scalar_lea.vmem (%p1810_p4), %s2096_s7, %s1339_s12  }
  0x19   : > { %v302_v10 = vld [vmem:[%s1840_s8] sm:$0xff]  ;;  %v303_v13 = vld [vmem:[%s1840_s8 + $0x8] sm:$0xff]  ;;  %v304_v14 = vld [vmem:[%s1840_s8 + $0x10] sm:$0xff] }
  0x1a   : > { %1418 = vmatprep.mubr.msk.f32.mxu0 %vm329_vm0, %v302_v10  ;;  %v310_v15 = vld [vmem:[%s1840_s8 + $0x40] sm:$0xff]  ;;  %v311_v16 = vld [vmem:[%s1840_s8 + $0x48] sm:$0xff]  ;;  %v312_v17 = vld [vmem:[%s1840_s8 + $0x50] sm:$0xff] }
  0x1b   : > { %1430 = vmatprep.mubr.msk.f32.mxu1 %vm329_vm0, %v310_v15  ;;  %1419 = vmatmul.mubr.msk.f32.vlgmr.msra.gmra.mrb[0].mxu0 %vm329_vm0, %v303_v13  ;;  %v305_v21 = vld [vmem:[%s1840_s8 + $0x18] sm:$0xff]  ;;  %v306_v22 = vld [vmem:[%s1840_s8 + $0x20] sm:$0xff]  ;;  %v307_v26 = vld [vmem:[%s1840_s8 + $0x28] sm:$0xff] }
  0x1c   : > { %1421 = vmatprep.mubr.msk.f32.mxu0 %vm329_vm0, %v304_v14  ;;  %1431 = vmatmul.mubr.msk.f32.vlgmr.msra.gmra.mrb[0].mxu1 %vm329_vm0, %v311_v16  ;;  %v313_v23 = vld [vmem:[%s1840_s8 + $0x58] sm:$0xff]  ;;  %v314_v24 = vld [vmem:[%s1840_s8 + $0x60] sm:$0xff]  ;;  %v308_v27 = vld [vmem:[%s1840_s8 + $0x30] sm:$0xff] }
  0x1d   : > { %1433 = vmatprep.mubr.msk.f32.mxu1 %vm329_vm0, %v312_v17  ;;  %1533 = vmatpush3.bf16.msra.mxu1 %v1530_v9  ;;  %v315_v28 = vld [vmem:[%s1840_s8 + $0x68] sm:$0xff]  ;;  %v316_v29 = vld [vmem:[%s1840_s8 + $0x70] sm:$0xff]  ;;  %v309_v30 = vld [vmem:[%s1840_s8 + $0x38] sm:$0xff] }
  0x1e   : > { %1535 = vmatprep.subr.bf16.mxu1 %v1534_v18  ;;  %v317_v31 = vld [vmem:[%s1840_s8 + $0x78] sm:$0xff]  ;;  %1549 = vmatpush3.bf16.msra.mxu0 %v1546_v38  ;;  %s1268_s8 = sshll.u32 %s280_s30, 7 }
  0x1f   : > { %1422 = vmatmul.mubr.msk.f32.gmra.mrb[2].mxu0 %vm329_vm0, %v305_v21  ;;  %1551 = vmatprep.subr.bf16.mxu0 %v1550_v40  ;;  %s1955_s11 = scalar_lea.vmem [#allocation3], %s1268_s8  }
  0x20   : > { %1424 = vmatprep.mubr.msk.f32.mxu0 %vm329_vm0, %v306_v22  ;;  %1434 = vmatmul.mubr.msk.f32.gmra.mrb[2].mxu1 %vm329_vm0, %v313_v23 }
  0x21   : > { %1436 = vmatprep.mubr.msk.f32.mxu1 %vm329_vm0, %v314_v24  ;;  %1537 = vmatpush3.bf16.msra.mxu1 %v1534_v18 }
  0x22   : > { %1539 = vmatprep.subr.bf16.mxu1 %v1538_v25  ;;  %1553 = vmatpush3.bf16.msra.mxu0 %v1550_v40 }
  0x23   : > { %1425 = vmatmul.mubr.msk.f32.gmra.mrb[4].mxu0 %vm329_vm0, %v307_v26  ;;  %1555 = vmatprep.subr.bf16.mxu0 %v1554_v43 }
  0x24   : > { %1427 = vmatprep.mubr.msk.f32.mxu0 %vm329_vm0, %v308_v27  ;;  %1437 = vmatmul.mubr.msk.f32.gmra.mrb[4].mxu1 %vm329_vm0, %v315_v28 }
  0x25   : > { %1439 = vmatprep.mubr.msk.f32.mxu1 %vm329_vm0, %v316_v29  ;;  %1541 = vmatpush3.bf16.msra.mxu1 %v1538_v25  ;;  %v770_v29 = vld [vmem:[%s2094_s5 + $0x30] sm:$0xff] }
  0x26   : > { %1543 = vmatprep.subr.bf16.mxu1 %v1542_v34  ;;  %1557 = vmatpush3.bf16.msra.mxu0 %v1554_v43 }
  0x27   : > { %1428 = vmatmul.mubr.msk.f32.gmra.mrb[6].mxu0 %vm329_vm0, %v309_v30  ;;  %v771_v30 = vld [vmem:[%s2094_s5 + $0x38] sm:$0xff] }
  0x28   : > { %1440 = vmatmul.mubr.msk.f32.gmra.mrb[6].mxu1 %vm329_vm0, %v317_v31  ;;  %v1558_v31 = vpack.c.bf16 %v771_v30, %v770_v29 }
  0x29   : > { %1545 = vmatpush3.bf16.msra.mxu1 %v1542_v34 }
  0x2a   : > { %1559 = vmatprep.subr.bf16.mxu0 %v1558_v31 }
  0x2b   : > { %1561 = vmatpush3.bf16.msra.mxu0 %v1558_v31 }
  0xee   : > { %v1420_v45 = vpop.f32.mrb[0].mxu0 }
  0xef   : > { %v450_v46 = vadd.f32 %v1420_v45, %v1271_v44  ;;  %v444_v47 = vpop.f32.mrb[1].mxu0  ;;  %v1432_v48 = vpop.f32.mrb[0].mxu1 }
  0xf0   : > { %v445_v49 = vadd.f32 %v1271_v44, %v444_v47  ;;  %v484_v50 = vpop.f32.mrb[1].mxu1  ;;  %v490_v16 = vadd.f32 %v1432_v48, %v1271_v44 }
  0xf1   : > { %v524_v53 = vmax.f32 %v450_v46, 0.0  ;;  %v485_v5 = vadd.f32 %v1271_v44, %v484_v50 }
  0xf2   : > { %v523_v51 = vmax.f32 %v445_v49, 0.0  ;;  %v1423_v52 = vpop.f32.mrb[2].mxu0  ;;  %v532_v19 = vmax.f32 %v490_v16, 0.0 }
  0xf3   : > { %v460_v54 = vadd.f32 %v1423_v52, %v1271_v44  ;;  %v454_v55 = vpop.f32.mrb[3].mxu0  ;;  %v1435_v56 = vpop.f32.mrb[2].mxu1  ;;  %v531_v13 = vmax.f32 %v485_v5, 0.0 }
  0xf4   : > { %v455_v57 = vadd.f32 %v1271_v44, %v454_v55  ;;  %1458 = vmatprep.mubr.msk.f32.mxu1 %vm554_vm1, %v523_v51  ;;  %v494_v58 = vpop.f32.mrb[3].mxu1  ;;  %v500_v20 = vadd.f32 %v1435_v56, %v1271_v44 }
  0xf5   : > { %1459 = vmatmul.mubr.msk.f32.vlgmr.msra.gmra.mrb[8].mxu1 %vm554_vm1, %v524_v53  ;;  %v526_v61 = vmax.f32 %v460_v54, 0.0  ;;  %v495_v14 = vadd.f32 %v1271_v44, %v494_v58 }
  0xf6   : > { %v525_v59 = vmax.f32 %v455_v57, 0.0  ;;  %v1426_v60 = vpop.f32.mrb[4].mxu0  ;;  %v534_v23 = vmax.f32 %v500_v20, 0.0 }
  0xf7   : > { %v470_v62 = vadd.f32 %v1426_v60, %v1271_v44  ;;  %v464_v63 = vpop.f32.mrb[5].mxu0  ;;  %v1438_v0 = vpop.f32.mrb[4].mxu1  ;;  %v533_v17 = vmax.f32 %v495_v14, 0.0 }
  0xf8   : > { %v465_v1 = vadd.f32 %v1271_v44, %v464_v63  ;;  %1461 = vmatprep.mubr.msk.f32.mxu1 %vm554_vm1, %v525_v59  ;;  %v504_v2 = vpop.f32.mrb[5].mxu1  ;;  %v510_v24 = vadd.f32 %v1438_v0, %v1271_v44 }
  0xf9   : > { %1462 = vmatmul.mubr.msk.f32.gmra.mrb[10].mxu1 %vm554_vm1, %v526_v61  ;;  %v528_v6 = vmax.f32 %v470_v62, 0.0  ;;  %v505_v18 = vadd.f32 %v1271_v44, %v504_v2 }
  0xfa   : > { %v527_v3 = vmax.f32 %v465_v1, 0.0  ;;  %v1429_v4 = vpop.f32.mrb[6].mxu0  ;;  %v536_v26 = vmax.f32 %v510_v24, 0.0 }
  0xfb   : > { %v480_v7 = vadd.f32 %v1429_v4, %v1271_v44  ;;  %v474_v8 = vpop.f32.mrb[7].mxu0  ;;  %v1441_v9 = vpop.f32.mrb[6].mxu1  ;;  %v535_v21 = vmax.f32 %v505_v18, 0.0 }
  0xfc   : > { %v475_v10 = vadd.f32 %v1271_v44, %v474_v8  ;;  %1464 = vmatprep.mubr.msk.f32.mxu1 %vm554_vm1, %v527_v3  ;;  %v514_v11 = vpop.f32.mrb[7].mxu1  ;;  %v520_v27 = vadd.f32 %v1441_v9, %v1271_v44 }
  0xfd   : > { %1465 = vmatmul.mubr.msk.f32.gmra.mrb[12].mxu1 %vm554_vm1, %v528_v6  ;;  %v530_v15 = vmax.f32 %v480_v7, 0.0  ;;  %v515_v22 = vadd.f32 %v1271_v44, %v514_v11 }
  0xfe   : > { %v529_v12 = vmax.f32 %v475_v10, 0.0  ;;  %v538_v28 = vmax.f32 %v520_v27, 0.0 }
  0xff   : > { %v537_v25 = vmax.f32 %v515_v22, 0.0 }
 0x100   : > { %1467 = vmatprep.mubr.msk.f32.mxu1 %vm554_vm1, %v529_v12 }
 0x101   : > { %1468 = vmatmul.mubr.msk.f32.gmra.mrb[14].mxu1 %vm554_vm1, %v530_v15 }
 0x102   : > { %1470 = vmatprep.mubr.msk.f32.mxu1 %vm554_vm1, %v531_v13 }
 0x105   : > { %1471 = vmatmul.mubr.msk.f32.gmra.mrb[16].mxu1 %vm554_vm1, %v532_v19 }
 0x106   : > { %1473 = vmatprep.mubr.msk.f32.mxu1 %vm554_vm1, %v533_v17  ;;  %v1305_v17 = vld [vmem:[#allocation2] ss:$0 sm:$0xff] }
 0x109   : > { %1474 = vmatmul.mubr.msk.f32.gmra.mrb[18].mxu1 %vm554_vm1, %v534_v23 }
 0x10a   : > { %1476 = vmatprep.mubr.msk.f32.mxu1 %vm554_vm1, %v535_v21 }
 0x10d   : > { %1477 = vmatmul.mubr.msk.f32.gmra.mrb[20].mxu1 %vm554_vm1, %v536_v26 }
 0x10e   : > { %1479 = vmatprep.mubr.msk.f32.mxu1 %vm554_vm1, %v537_v25 }
 0x111   : > { %1480 = vmatmul.mubr.msk.f32.gmra.mrb[22].mxu1 %vm554_vm1, %v538_v28 }
 0x1c8   : > { %v1460_v33 = vpop.f32.mrb[8].mxu1 }
 0x1c9   : > { %v675_v34 = vadd.f32 %v1460_v33, %v1288_v32  ;;  %v669_v35 = vpop.f32.mrb[9].mxu1 }
 0x1ca   : > { %v670_v36 = vadd.f32 %v1288_v32, %v669_v35 }
 0x1cb   : > { %v749_v39 = vmax.f32 %v675_v34, 0.0 }
 0x1cc   : > { %v748_v37 = vmax.f32 %v670_v36, 0.0  ;;  %v1463_v38 = vpop.f32.mrb[10].mxu1 }
 0x1cd   : > { %v685_v40 = vadd.f32 %v1463_v38, %v1288_v32  ;;  %v679_v41 = vpop.f32.mrb[11].mxu1 }
 0x1ce   : > { %v680_v42 = vadd.f32 %v1288_v32, %v679_v41  ;;  %1498 = vmatprep.mubr.msk.f32.mxu0 %vm554_vm1, %v748_v37 }
 0x1cf   : > { %1499 = vmatmul.mubr.msk.f32.vlgmr.msra.gmra.mrb[8].mxu0 %vm554_vm1, %v749_v39  ;;  %v751_v45 = vmax.f32 %v685_v40, 0.0 }
 0x1d0   : > { %v750_v43 = vmax.f32 %v680_v42, 0.0  ;;  %v1466_v44 = vpop.f32.mrb[12].mxu1 }
 0x1d1   : > { %v695_v46 = vadd.f32 %v1466_v44, %v1288_v32  ;;  %v689_v47 = vpop.f32.mrb[13].mxu1 }
 0x1d2   : > { %v690_v48 = vadd.f32 %v1288_v32, %v689_v47  ;;  %1501 = vmatprep.mubr.msk.f32.mxu0 %vm554_vm1, %v750_v43 }
 0x1d3   : > { %1502 = vmatmul.mubr.msk.f32.gmra.mrb[10].mxu0 %vm554_vm1, %v751_v45  ;;  %v753_v51 = vmax.f32 %v695_v46, 0.0 }
 0x1d4   : > { %v752_v49 = vmax.f32 %v690_v48, 0.0  ;;  %v1469_v50 = vpop.f32.mrb[14].mxu1 }
 0x1d5   : > { %v705_v52 = vadd.f32 %v1469_v50, %v1288_v32  ;;  %v699_v53 = vpop.f32.mrb[15].mxu1 }
 0x1d6   : > { %v700_v54 = vadd.f32 %v1288_v32, %v699_v53  ;;  %1504 = vmatprep.mubr.msk.f32.mxu0 %vm554_vm1, %v752_v49 }
 0x1d7   : > { %1505 = vmatmul.mubr.msk.f32.gmra.mrb[12].mxu0 %vm554_vm1, %v753_v51  ;;  %v755_v57 = vmax.f32 %v705_v52, 0.0 }
 0x1d8   : > { %v754_v55 = vmax.f32 %v700_v54, 0.0  ;;  %v1472_v56 = vpop.f32.mrb[16].mxu1 }
 0x1d9   : > { %v715_v58 = vadd.f32 %v1472_v56, %v1288_v32  ;;  %v709_v59 = vpop.f32.mrb[17].mxu1 }
 0x1da   : > { %v710_v60 = vadd.f32 %v1288_v32, %v709_v59  ;;  %1507 = vmatprep.mubr.msk.f32.mxu0 %vm554_vm1, %v754_v55 }
 0x1db   : > { %1508 = vmatmul.mubr.msk.f32.gmra.mrb[14].mxu0 %vm554_vm1, %v755_v57  ;;  %v757_v63 = vmax.f32 %v715_v58, 0.0 }
 0x1dc   : > { %v756_v61 = vmax.f32 %v710_v60, 0.0  ;;  %v1475_v62 = vpop.f32.mrb[18].mxu1 }
 0x1dd   : > { %v725_v0 = vadd.f32 %v1475_v62, %v1288_v32  ;;  %v719_v1 = vpop.f32.mrb[19].mxu1 }
 0x1de   : > { %v720_v2 = vadd.f32 %v1288_v32, %v719_v1  ;;  %1510 = vmatprep.mubr.msk.f32.mxu0 %vm554_vm1, %v756_v61 }
 0x1df   : > { %1511 = vmatmul.mubr.msk.f32.gmra.mrb[16].mxu0 %vm554_vm1, %v757_v63  ;;  %v759_v5 = vmax.f32 %v725_v0, 0.0 }
 0x1e0   : > { %v758_v3 = vmax.f32 %v720_v2, 0.0  ;;  %v1478_v4 = vpop.f32.mrb[20].mxu1 }
 0x1e1   : > { %v735_v6 = vadd.f32 %v1478_v4, %v1288_v32  ;;  %v729_v7 = vpop.f32.mrb[21].mxu1 }
 0x1e2   : > { %v730_v8 = vadd.f32 %v1288_v32, %v729_v7  ;;  %1513 = vmatprep.mubr.msk.f32.mxu0 %vm554_vm1, %v758_v3 }
 0x1e3   : > { %1514 = vmatmul.mubr.msk.f32.gmra.mrb[18].mxu0 %vm554_vm1, %v759_v5  ;;  %v761_v11 = vmax.f32 %v735_v6, 0.0 }
 0x1e4   : > { %v760_v9 = vmax.f32 %v730_v8, 0.0  ;;  %v1481_v10 = vpop.f32.mrb[22].mxu1 }
 0x1e5   : > { %v745_v12 = vadd.f32 %v1481_v10, %v1288_v32  ;;  %v739_v13 = vpop.f32.mrb[23].mxu1 }
 0x1e6   : > { %v740_v14 = vadd.f32 %v1288_v32, %v739_v13  ;;  %1516 = vmatprep.mubr.msk.f32.mxu0 %vm554_vm1, %v760_v9 }
 0x1e7   : > { %1517 = vmatmul.mubr.msk.f32.gmra.mrb[20].mxu0 %vm554_vm1, %v761_v11  ;;  %v763_v16 = vmax.f32 %v745_v12, 0.0 }
 0x1e8   : > { %v762_v15 = vmax.f32 %v740_v14, 0.0 }
 0x1ea   : > { %1519 = vmatprep.mubr.msk.f32.mxu0 %vm554_vm1, %v762_v15 }
 0x1eb   : > { %1520 = vmatmul.mubr.msk.f32.gmra.mrb[22].mxu0 %vm554_vm1, %v763_v16 }
 0x2a2   : > { %v1500_v18 = vpop.f32.mrb[8].mxu0 }
 0x2a3   : > { %v899_v19 = vadd.f32 %v1500_v18, %v1305_v17  ;;  %v893_v20 = vpop.f32.mrb[9].mxu0 }
 0x2a4   : > { %v894_v21 = vadd.f32 %v1305_v17, %v893_v20 }
 0x2a5   : > { %974 = vst.msk [vmem:[%s1955_s11 + $0x8] sm:$0xff] %vm972_vm2, %v899_v19 }
 0x2a6   : > { %973 = vst.msk [vmem:[%s1955_s11] sm:$0xff] %vm972_vm2, %v894_v21  ;;  %v1503_v22 = vpop.f32.mrb[10].mxu0 }
 0x2a7   : > { %v909_v23 = vadd.f32 %v1503_v22, %v1305_v17  ;;  %v903_v24 = vpop.f32.mrb[11].mxu0 }
 0x2a8   : > { %v904_v25 = vadd.f32 %v1305_v17, %v903_v24 }
 0x2a9   : > { %976 = vst.msk [vmem:[%s1955_s11 + $0x18] sm:$0xff] %vm972_vm2, %v909_v23 }
 0x2aa   : > { %975 = vst.msk [vmem:[%s1955_s11 + $0x10] sm:$0xff] %vm972_vm2, %v904_v25  ;;  %v1506_v26 = vpop.f32.mrb[12].mxu0 }
 0x2ab   : > { %v919_v27 = vadd.f32 %v1506_v26, %v1305_v17  ;;  %v913_v28 = vpop.f32.mrb[13].mxu0 }
 0x2ac   : > { %v914_v29 = vadd.f32 %v1305_v17, %v913_v28 }
 0x2ad   : > { %978 = vst.msk [vmem:[%s1955_s11 + $0x28] sm:$0xff] %vm972_vm2, %v919_v27 }
 0x2ae   : > { %977 = vst.msk [vmem:[%s1955_s11 + $0x20] sm:$0xff] %vm972_vm2, %v914_v29  ;;  %v1509_v30 = vpop.f32.mrb[14].mxu0 }
 0x2af   : > { %v929_v31 = vadd.f32 %v1509_v30, %v1305_v17  ;;  %v923_v32 = vpop.f32.mrb[15].mxu0 }
 0x2b0   : > { %v924_v33 = vadd.f32 %v1305_v17, %v923_v32 }
 0x2b1   : > { %980 = vst.msk [vmem:[%s1955_s11 + $0x38] sm:$0xff] %vm972_vm2, %v929_v31 }
 0x2b2   : > { %979 = vst.msk [vmem:[%s1955_s11 + $0x30] sm:$0xff] %vm972_vm2, %v924_v33  ;;  %v1512_v34 = vpop.f32.mrb[16].mxu0 }
 0x2b3   : > { %v939_v35 = vadd.f32 %v1512_v34, %v1305_v17  ;;  %v933_v36 = vpop.f32.mrb[17].mxu0 }
 0x2b4   : > { %v934_v37 = vadd.f32 %v1305_v17, %v933_v36 }
 0x2b5   : > { %982 = vst.msk [vmem:[%s1955_s11 + $0x48] sm:$0xff] %vm972_vm2, %v939_v35 }
 0x2b6   : > { %981 = vst.msk [vmem:[%s1955_s11 + $0x40] sm:$0xff] %vm972_vm2, %v934_v37  ;;  %v1515_v38 = vpop.f32.mrb[18].mxu0 }
 0x2b7   : > { %v949_v39 = vadd.f32 %v1515_v38, %v1305_v17  ;;  %v943_v40 = vpop.f32.mrb[19].mxu0 }
 0x2b8   : > { %v944_v41 = vadd.f32 %v1305_v17, %v943_v40 }
 0x2b9   : > { %984 = vst.msk [vmem:[%s1955_s11 + $0x58] sm:$0xff] %vm972_vm2, %v949_v39 }
 0x2ba   : > { %983 = vst.msk [vmem:[%s1955_s11 + $0x50] sm:$0xff] %vm972_vm2, %v944_v41  ;;  %v1518_v42 = vpop.f32.mrb[20].mxu0 }
 0x2bb   : > { %v959_v43 = vadd.f32 %v1518_v42, %v1305_v17  ;;  %v953_v44 = vpop.f32.mrb[21].mxu0 }
 0x2bc   : > { %v954_v45 = vadd.f32 %v1305_v17, %v953_v44  ;;  %995 = sbr.rel (!%p1810_p4) target bundleno = 756 (0x2f4), region = 52 }
 0x2bd   : > { %986 = vst.msk [vmem:[%s1955_s11 + $0x68] sm:$0xff] %vm972_vm2, %v959_v43 }
 0x2be   : > { %985 = vst.msk [vmem:[%s1955_s11 + $0x60] sm:$0xff] %vm972_vm2, %v954_v45  ;;  %v1521_v46 = vpop.f32.mrb[22].mxu0 }
 0x2bf   : > { %v969_v47 = vadd.f32 %v1521_v46, %v1305_v17  ;;  %v963_v48 = vpop.f32.mrb[23].mxu0 }
 0x2c0   : > { %v964_v49 = vadd.f32 %v1305_v17, %v963_v48 }
 0x2c1   : > { %988 = vst.msk [vmem:[%s1955_s11 + $0x78] sm:$0xff] %vm972_vm2, %v969_v47 }
 0x2c2   : > { %987 = vst.msk [vmem:[%s1955_s11 + $0x70] sm:$0xff] %vm972_vm2, %v964_v49 }
 0x2c3   : > { %s2105_s26 = smov (!%p998_p8, %s997_s26), 16 }
 0x2c4   : > { %s1324_s16 = sshll.u32 %s2105_s26, 7 }
 0x2c5   : > { %p1327_p9 = scmp.eq.s32.totalorder %s1324_s16, 0 }
 0x2c6   : > { %s2002_s18 = sshrl.u32 (!%p1327_p9), %s2105_s26, 4 }
 0x2c7   : > { %1006 = sbr.rel (%p1327_p9) target bundleno = 756 (0x2f4), region = 56  ;;  %p1328_p10 = scmp.le.s32.totalorder (!%p1327_p9), %s2002_s18, 0 }
 0x2ce   : > { %1220 = sbr.rel (%p1328_p10) target bundleno = 735 (0x2df), region = 132  ;;  %s2098_s6 = smov (!%p1328_p10), %s1996_s15 }
 0x2cf   : > { %s2099_s10 = smov (!%p1328_p10), %s1955_s11  ;;  %s2011_s17 = smov (!%p1328_p10), 0  }
 0x2d0   : > { %s2013_s19 = smov (!%p1328_p10), 0  }
 0x2d5 LB: >> { %v1098_v50 = vld [vmem:[%s1716_s10] sm:$0xff]  ;;  %v1100_v51 = vld [vmem:[%s1716_s10 + $0x8] sm:$0xff]  ;;  %v1102_v52 = vld [vmem:[%s1716_s10 + $0x10] sm:$0xff]  ;;  %s1130_s20 = sadd.s32 1, %s1720_s17  ;;  %s1092_s19 = sadd.s32 1, %s1724_s19   ;;  %s1724_s19 = sphi %s2013_s19, %s1092_s19   ;;  %s1720_s17 = sphi %s2011_s17, %s2100_s17   ;;  %s1716_s10 = sphi %s2099_s10, %s1135_s10   ;;  %s1712_s6 = sphi %s2098_s6, %s1136_s6  }
 0x2d6   : >> { %1099 = vst [vmem:[%s1712_s6] sm:$0xff] %v1098_v50  ;;  %1101 = vst [vmem:[%s1712_s6 + $0x8] sm:$0xff] %v1100_v51  ;;  %v1104_v53 = vld [vmem:[%s1716_s10 + $0x18] sm:$0xff]  ;;  %v1106_v54 = vld [vmem:[%s1716_s10 + $0x20] sm:$0xff]  ;;  %p1131_p11 = scmp.ge.s32.totalorder %s1130_s20, %s2002_s18  ;;  %p1091_p12 = scmp.ge.s32.totalorder %s1092_s19, %s2002_s18 }
 0x2d7   : >> { %1103 = vst [vmem:[%s1712_s6 + $0x10] sm:$0xff] %v1102_v52  ;;  %v1108_v55 = vld [vmem:[%s1716_s10 + $0x28] sm:$0xff]  ;;  %1105 = vst [vmem:[%s1712_s6 + $0x18] sm:$0xff] %v1104_v53  ;;  %v1110_v56 = vld [vmem:[%s1716_s10 + $0x30] sm:$0xff] }
 0x2d8   : >> { %1107 = vst [vmem:[%s1712_s6 + $0x20] sm:$0xff] %v1106_v54  ;;  %1109 = vst [vmem:[%s1712_s6 + $0x28] sm:$0xff] %v1108_v55  ;;  %v1112_v57 = vld [vmem:[%s1716_s10 + $0x38] sm:$0xff]  ;;  %v1114_v58 = vld [vmem:[%s1716_s10 + $0x40] sm:$0xff]  ;;  %s2107_s20 = smov (%p1131_p11, %s1130_s20), 0  ;;  %1094 = sbr.rel (!%p1091_p12) target bundleno = 725 (0x2d5), region = 138 }
 0x2d9   : >> { %1111 = vst [vmem:[%s1712_s6 + $0x30] sm:$0xff] %v1110_v56  ;;  %1113 = vst [vmem:[%s1712_s6 + $0x38] sm:$0xff] %v1112_v57  ;;  %v1116_v59 = vld [vmem:[%s1716_s10 + $0x48] sm:$0xff]  ;;  %v1118_v60 = vld [vmem:[%s1716_s10 + $0x50] sm:$0xff]  ;;  %s1329_s21 = sshll.u32 %s2107_s20, 7  ;;  %s2100_s17 = smov %s2107_s20 }
 0x2da   : >> { %1115 = vst [vmem:[%s1712_s6 + $0x40] sm:$0xff] %v1114_v58  ;;  %v1120_v61 = vld [vmem:[%s1716_s10 + $0x58] sm:$0xff]  ;;  %1117 = vst [vmem:[%s1712_s6 + $0x48] sm:$0xff] %v1116_v59  ;;  %v1122_v62 = vld [vmem:[%s1716_s10 + $0x60] sm:$0xff] }
 0x2db   : >> { %1119 = vst [vmem:[%s1712_s6 + $0x50] sm:$0xff] %v1118_v60  ;;  %1121 = vst [vmem:[%s1712_s6 + $0x58] sm:$0xff] %v1120_v61  ;;  %v1124_v63 = vld [vmem:[%s1716_s10 + $0x68] sm:$0xff]  ;;  %v1126_v0 = vld [vmem:[%s1716_s10 + $0x70] sm:$0xff] }
 0x2dc   : >> { %1123 = vst [vmem:[%s1712_s6 + $0x60] sm:$0xff] %v1122_v62  ;;  %1125 = vst [vmem:[%s1712_s6 + $0x68] sm:$0xff] %v1124_v63  ;;  %v1128_v1 = vld [vmem:[%s1716_s10 + $0x78] sm:$0xff]  ;;  %s1135_s10 = scalar_lea.vmem %s1955_s11, %s1329_s21 [#allocation3]  }
 0x2dd   : >> { %1127 = vst [vmem:[%s1712_s6 + $0x70] sm:$0xff] %v1126_v0  ;;  %1129 = vst [vmem:[%s1712_s6 + $0x78] sm:$0xff] %v1128_v1  ;;  %s1136_s6 = scalar_lea.vmem %s1996_s15, %s1329_s21  }
 0x2df PF: > { %s2071_s22 = sand.u32 15, %s2105_s26   ;;  %s1340_s23 = sshll.u32 %s2002_s18, 7 }
 0x2e0   : > { %s1141_s24 = scalar_lea.vmem %s1955_s11, %s1340_s23 [#allocation3]   ;;  %s1143_s25 = scalar_lea.vmem %s1996_s15, %s1340_s23  }
 0x2e1   : > { %p1334_p13 = scmp.le.s32.totalorder %s2071_s22, 0 }
 0x2e2   : > { %s1726_s28 = smov (!%p1334_p13), %s1143_s25   ;;  %s1730_s30 = smov (!%p1334_p13), %s1141_s24  }
 0x2e3   : > { %1234 = sbr.rel (%p1334_p13) target bundleno = 756 (0x2f4), region = 143  ;;  %s1734_s8 = smov (!%p1334_p13), 0  }
 0x2e4   : > { %s1738_s12 = smov (!%p1334_p13), 0  }
 0x2ea LB: >> { %v1153_v2 = vld [vmem:[%s1732_s30] sm:$0xff]  ;;  %s1155_s26 = sadd.s32 1, %s1736_s8  ;;  %s1147_s12 = sadd.s32 1, %s1740_s12   ;;  %s1740_s12 = sphi %s1738_s12, %s1147_s12   ;;  %s1736_s8 = sphi %s1734_s8, %s1735_s8   ;;  %s1732_s30 = sphi %s1730_s30, %s1160_s30   ;;  %s1728_s28 = sphi %s1726_s28, %s1161_s28  }
 0x2eb   : >> { %1154 = vst [vmem:[%s1728_s28] sm:$0xff] %v1153_v2  ;;  %p1156_p0 = scmp.ge.s32.totalorder %s1155_s26, %s2071_s22  ;;  %p1146_p1 = scmp.ge.s32.totalorder %s1147_s12, %s2071_s22 }
 0x2ed   : >> { %s2109_s26 = smov (%p1156_p0, %s1155_s26), 0  ;;  %1149 = sbr.rel (!%p1146_p1) target bundleno = 746 (0x2ea), region = 149 }
 0x2ee   : >> { %s1335_s11 = sshll.u32 %s2109_s26, 3  ;;  %s1735_s8 = smov %s2109_s26  }
 0x2ef   : >> { %s1160_s30 = scalar_lea.vmem %s1141_s24, %s1335_s11 [#allocation3]   ;;  %s1161_s28 = scalar_lea.vmem %s1143_s25, %s1335_s11  }
 0x2f4 PF: > { %p16_p2 = scmp.ge.s32.totalorder %s1800_s29, 4   ;;  %s2101_s26 = smov %s1704_s27 }
 0x2f5   : > { %s2102_s27 = smov %s1808_s9  ;;  %s2103_s28 = smov %s1800_s29 }
 0x2f6   :  { %18 = sbr.rel (!%p16_p2) target bundleno = 5 (0x5), region = 160 }

</bundles_post_ra>
